<compile_context>
chip_gen: v7x
topology: tpu7x:2x2x1
jax: 0.10.0
libtpu: 0.0.40
codegen_flags: <defaults>
</compile_context>

<pallas_src>
import jax
import jax.numpy as jnp
from jax.experimental import pallas as pl
from jax.experimental.pallas import tpu as pltpu


def sigmoid_classifier_kernel(xt_ref, w_ref, b_ref, o_ref):
    # xt_ref: (F, TN)  features on sublanes, batch on lanes
    # w_ref : (F, 1)   weight column (lane-broadcast against xt)
    # b_ref : (1, 1)   bias scalar, resident in SMEM
    # o_ref : (1, TN)  lane-dense probability row
    p = xt_ref[...] * w_ref[...]                       # VPU broadcast multiply
    s = jnp.sum(p, axis=0, keepdims=True)              # XLU sublane reduce -> (1, TN)
    s = s + b_ref[0, 0]                                # scalar bias from SMEM
    # sigmoid(z) = 0.5 * (1 + tanh(z / 2)) -> transcendental on the EUP slot
    o_ref[...] = (0.5 + 0.5 * jnp.tanh(0.5 * s)).astype(o_ref.dtype)


def sigmoid_classifier_forward(x, w, b, *, block_n=512):
    """x: (N, in_features); w: (1, in_features); b: (1,). Returns (N, 1) probs."""
    N, F = x.shape
    assert w.shape == (1, F) and b.shape == (1,)

    # Layout plumbing (outside the kernel): batch dim on the lane axis so the
    # kernel's output stores are lane-dense.
    xt = x.T                                  # (F, N)
    w_col = w.T                               # (F, 1)
    b_sc = b.reshape(1, 1).astype(jnp.float32)

    # Full-extent block when N is small (always legal); 512-lane tiles otherwise.
    tn = N if N <= block_n else block_n
    grid = (pl.cdiv(N, tn),)

    out_row = pl.pallas_call(
        sigmoid_classifier_kernel,
        out_shape=jax.ShapeDtypeStruct((1, N), jnp.float32),
        grid=grid,
        in_specs=[
            pl.BlockSpec((F, tn), lambda i: (0, i)),             # x^T lane tiles
            pl.BlockSpec((F, 1), lambda i: (0, 0)),              # weight column
            pl.BlockSpec(memory_space=pltpu.MemorySpace.SMEM),   # bias scalar
        ],
        out_specs=pl.BlockSpec((1, tn), lambda i: (0, i)),       # lane-dense row
        compiler_params=pltpu.CompilerParams(
            dimension_semantics=("parallel",),
        ),
    )(xt, w_col, b_sc)

    return out_row.reshape(N, 1)              # match PyTorch's (N, 1) output


def sigmoid_classifier_reference(x, w, b):
    # Full-precision reference (avoid default bf16 matmul passes on TPU).
    logits = jnp.einsum("nf,of->no", x, w,
                        precision=jax.lax.Precision.HIGHEST) + b   # (N, 1)
    return jax.nn.sigmoid(logits)


if __name__ == "__main__":
    N, in_features = 8, 32

    key = jax.random.PRNGKey(0)
    kx, kw, kb = jax.random.split(key, 3)
    x = jax.random.normal(kx, (N, in_features), jnp.float32)

    # PyTorch nn.Linear-style init: U(-1/sqrt(fan_in), 1/sqrt(fan_in))
    bound = 1.0 / (in_features ** 0.5)
    w = jax.random.uniform(kw, (1, in_features), jnp.float32, -bound, bound)
    b = jax.random.uniform(kb, (1,), jnp.float32, -bound, bound)

    out = sigmoid_classifier_forward(x, w, b)
    out = jax.block_until_ready(out)

    ref = sigmoid_classifier_reference(x, w, b)
    assert out.shape == (N, 1)
    assert bool(jnp.all((out > 0.0) & (out < 1.0)))
    assert jnp.allclose(out, ref, atol=1e-5, rtol=1e-5)

    print("KERNEL_OK")
</pallas_src>

<mosaic_0001>
module attributes {stable_mosaic.version = 11 : i64} {
  func.func @sigmoid_classifier_kernel(%arg0: i32, %arg1: memref<32x8xf32, #tpu.memory_space<vmem>>, %arg2: memref<32x1xf32, #tpu.memory_space<vmem>>, %arg3: memref<1x1xf32, #tpu.memory_space<smem>>, %arg4: memref<1x8xf32, #tpu.memory_space<vmem>>) attributes {dimension_semantics = [#tpu.dimension_semantics<parallel>], iteration_bounds = array<i64: 1>, scalar_prefetch = 0 : i64, scratch_operands = 0 : i64, tpu.core_type = #tpu.core_type<tc>, window_params = [{transform_indices = @transform_0, window_bounds = array<i64: 32, 8>}, {pipeline_mode = #tpu.pipeline_mode<synchronous>, transform_indices = @transform_1, window_bounds = array<i64: 32, 1>}, {transform_indices = @transform_2, window_bounds = array<i64: 1, 1>}, {transform_indices = @transform_3, window_bounds = array<i64: 1, 8>}]} {
    %c0 = arith.constant 0 : index
    %c0_0 = arith.constant 0 : index
    %0 = vector.load %arg1[%c0, %c0_0] : memref<32x8xf32, #tpu.memory_space<vmem>>, vector<32x8xf32>
    %c0_1 = arith.constant 0 : index
    %c0_2 = arith.constant 0 : index
    %1 = vector.load %arg2[%c0_1, %c0_2] : memref<32x1xf32, #tpu.memory_space<vmem>>, vector<32x1xf32>
    %2 = vector.broadcast %1 : vector<32x1xf32> to vector<32x8xf32>
    %3 = arith.mulf %0, %2 : vector<32x8xf32>
    %cst = arith.constant dense<0.000000e+00> : vector<8xf32>
    %4 = vector.multi_reduction <add>, %3, %cst [0] : vector<32x8xf32> to vector<8xf32>
    %5 = vector.shape_cast %4 : vector<8xf32> to vector<1x8xf32>
    %c0_3 = arith.constant 0 : index
    %c0_4 = arith.constant 0 : index
    %6 = memref.load %arg3[%c0_3, %c0_4] : memref<1x1xf32, #tpu.memory_space<smem>>
    %7 = vector.broadcast %6 : f32 to vector<1x8xf32>
    %8 = arith.addf %5, %7 : vector<1x8xf32>
    %cst_5 = arith.constant 5.000000e-01 : f32
    %9 = vector.broadcast %cst_5 : f32 to vector<1x8xf32>
    %10 = arith.mulf %9, %8 : vector<1x8xf32>
    %11 = math.tanh %10 : vector<1x8xf32>
    %cst_6 = arith.constant 5.000000e-01 : f32
    %12 = vector.broadcast %cst_6 : f32 to vector<1x8xf32>
    %13 = arith.mulf %12, %11 : vector<1x8xf32>
    %cst_7 = arith.constant 5.000000e-01 : f32
    %14 = vector.broadcast %cst_7 : f32 to vector<1x8xf32>
    %15 = arith.addf %14, %13 : vector<1x8xf32>
    %c0_8 = arith.constant 0 : index
    %c0_9 = arith.constant 0 : index
    %16 = vector.load %arg4[%c0_8, %c0_9] : memref<1x8xf32, #tpu.memory_space<vmem>>, vector<1x8xf32>
    tpu.vector_store %arg4[%c0_8, %c0_9], %15 {strides = array<i32>} : memref<1x8xf32, #tpu.memory_space<vmem>>, vector<1x8xf32>,
    return
  }
  func.func @transform_0(%arg0: i32) -> (i32, i32) {
    %c0_i32 = arith.constant 0 : i32
    %c0_i32_0 = arith.constant 0 : i32
    return %c0_i32, %arg0 : i32, i32
  }
  func.func @transform_1(%arg0: i32) -> (i32, i32) {
    %c0_i32 = arith.constant 0 : i32
    %c0_i32_0 = arith.constant 0 : i32
    %c0_i32_1 = arith.constant 0 : i32
    return %c0_i32, %c0_i32_0 : i32, i32
  }
  func.func @transform_2(%arg0: i32) -> (i32, i32) {
    %c0_i32 = arith.constant 0 : i32
    %c0_i32_0 = arith.constant 0 : i32
    %c0_i32_1 = arith.constant 0 : i32
    return %c0_i32, %c0_i32_0 : i32, i32
  }
  func.func @transform_3(%arg0: i32) -> (i32, i32) {
    %c0_i32 = arith.constant 0 : i32
    %c0_i32_0 = arith.constant 0 : i32
    return %c0_i32, %arg0 : i32, i32
  }
}

</mosaic_0001>

<bundles_post_ra>
// kernel: tpu_custom_call.1
= control target key start
LH: loop header
LB: loop body
LE: loop exit
PB: predicated region body
PF: predicated region fallthrough
CT: control target
= control target key end

     0   :  { %v115_v2 = vmov 0   ;;  %s176_s0 = inlined_call_operand.vmem [shape: f32[32,8], index: 0, kind: input, shape index: {}]   ;;  %s177_s1 = inlined_call_operand.vmem [shape: f32[32,1], index: 1, kind: input, shape index: {}]   ;;  %s178_s2 = inlined_call_operand.<no memory space> [shape: f32[1,1], index: 2, kind: input, shape index: {}]   ;;  %s179_s3 = inlined_call_operand.hbm [shape: f32[1,8], index: 3, kind: output, shape index: {}]  }
   0x1   :  { %v22_v0 = vld [vmem:[%s177_s1 + $0x10] sm:$0xff]  ;;  %v20_v1 = vld [vmem:[%s177_s1] sm:$0xff]  ;;  %88 = vset.pattern.permute.xlu1 %v115_v2  ;;  %87 = vset.pattern.permute.xlu0 %v115_v2 }
   0x2   :  { %36 = vperm.xlu1 %88, %v22_v0   ;;  %26 = vperm.xlu0 %87, %v20_v1  }
   0x3   :  { %9 = vsyncpa [#allocation4], 0  ;;  %v23_v3 = vld [vmem:[%s177_s1 + $0x18] sm:$0xff]  ;;  %v21_v4 = vld [vmem:[%s177_s1 + $0x8] sm:$0xff]  ;;  %vm48_vm0 = vcmask 64512   ;;  %v63_v29 = vstv %s178_s2  ;;  %vm69_vm1 = vcmask 57344  }
   0x4   :  { %v16_v7 = vld [vmem:[%s176_s0] sm:$0xff]  ;;  %v18_v8 = vld [vmem:[%s176_s0 + $0x10] sm:$0xff]  ;;  %v17_v9 = vld [vmem:[%s176_s0 + $0x8] sm:$0xff] }
   0x5   :  { %v19_v12 = vld [vmem:[%s176_s0 + $0x18] sm:$0xff]  ;;  %s116_s0 = smov [#allocation3]  }
   0x6   :  { %41 = vperm.xlu1 %88, %v23_v3   ;;  %31 = vperm.xlu0 %87, %v21_v4   ;;  %s77_s29 = sshll.u32 %s116_s0, 4  ;;  %s78_s29 = int_to_ptr.vmem [resolvable:$true] %s77_s29 }
   0x7   :  { %s91_s30 = scalar_lea.vmem %s78_s29, 16  ;;  %s95_s4 = scalar_lea.vmem %s78_s29, 32 }
   0x8   :  { %p92_p0 = scmp.ne.s32.totalorder %s78_s29, %s91_s30  ;;  %p96_p1 = scmp.lt.s32.totalorder %s78_s29, %s78_s29 }
   0x9   :  { %p97_p2 = scmp.lt.s32.totalorder %s95_s4, %s91_s30 }
   0xb   :  { %p98_p3 = por %p97_p2, %p96_p1 }
   0xd   :  { %p99_p4 = pnand %p98_p3, %p92_p0 }
  0x81   :  { %v37_v5 = vpop.permute.xlu1 %36  ;;  %v27_v6 = vpop.permute.xlu0 %26 }
  0x82   :  { %v44_v10 = vmul.f32 %v27_v6, %v16_v7  ;;  %v46_v14 = vmul.f32 %v37_v5, %v18_v8 }
  0x84   :  { %v49_v16 = vsel %vm48_vm0, %v44_v10, 0.0  ;;  %v52_v20 = vsel %vm48_vm0, %v46_v14, 0.0 }
  0x85   :  { %v42_v11 = vpop.permute.xlu1 %41  ;;  %v32_v13 = vpop.permute.xlu0 %31 }
  0x86   :  { %v45_v15 = vmul.f32 %v32_v13, %v17_v9  ;;  %v47_v17 = vmul.f32 %v42_v11, %v19_v12 }
  0x88   :  { %v50_v18 = vsel %vm48_vm0, %v45_v15, 0.0  ;;  %v54_v22 = vsel %vm48_vm0, %v47_v17, 0.0 }
  0x89   :  { %v51_v19 = vadd.f32 %v50_v18, %v49_v16 }
  0x8b   :  { %v53_v21 = vadd.f32 %v52_v20, %v51_v19 }
  0x8d   :  { %v55_v23 = vadd.f32 %v54_v22, %v53_v21 }
  0x8f   :  { %v56_v24 = vrot.slane %v55_v23, 4 }
  0x91   :  { %v57_v25 = vadd.f32 %v56_v24, %v55_v23 }
  0x93   :  { %v58_v26 = vrot.slane %v57_v25, 2 }
  0x95   :  { %v59_v27 = vadd.f32 %v58_v26, %v57_v25 }
  0x97   :  { %v60_v28 = vrot.slane %v59_v27, 1 }
  0x99   :  { %v61_v30 = vadd.f32 %v60_v28, %v59_v27 }
  0x9b   :  { %v64_v31 = vadd.f32 %v63_v29, %v61_v30 }
  0x9d   :  { %v65_v32 = vmul.f32 0.5, %v64_v31 }
  0x9f   :  { %89 = vtanh.f32 %v65_v32 }
  0xa9   :  { %v90_v33 = vpop.eup %89 }
  0xaa   :  { %v67_v34 = vmul.f32 0.5, %v90_v33 }
  0xac   :  { %v68_v35 = vadd.f32 0.5, %v67_v34 }
  0xae   :  { %70 = vst.msk [vmem:[#allocation3] sm:$0x1] %vm69_vm1, %v68_v35 }
  0xaf   :  { %102 = shalt.err (!%p99_p4)
}
  0xb0   :  { %s103_s6 = scalar_lea.hbm %s179_s3, 16 }
  0xb1   :  { %p104_p5 = scmp.ne.s32.totalorder %s179_s3, %s103_s6  ;;  %p107_p6 = scmp.lt.u32.totalorder %s103_s6, %s179_s3 }
  0xb3   :  { %p109_p7 = pnand %p107_p6, %p104_p5 }
  0xb5   :  { %112 = shalt.err (!%p109_p7)
}
  0xb6   :  { %80 = dma.vmem_to_hbm [thread:$0]  %s78_s29, 16, %s179_s3, [#allocation4]  }
  0xb7   :  { %113 = dma.done.wait [#allocation4], 16  }
  0xb8   :  { %114 = vsyncadd [#allocation4], 4294967280 }
  0xb9   :  { %84 = vsyncpa [#allocation4], 1 }

</bundles_post_ra>
